<compile_context>
chip_gen: v7x
topology: tpu7x:2x2x1
jax: 0.10.0
libtpu: 0.0.40
codegen_flags: <defaults>
</compile_context>

<pallas_src>
import functools

import jax
import jax.numpy as jnp
from jax import lax
from jax.experimental import pallas as pl
from jax.experimental.pallas import tpu as pltpu

BOTTLE = 16
THRESH = 1e-05
BN_EPS = 1e-05


def _sigmoid(x):
    # exp + reciprocal both route to the (otherwise idle) EUP slot.
    return pl.reciprocal(1.0 + jnp.exp(-x), approx=False)


# ---------------------------------------------------------------------------
# Fused kernel: conv-as-matmul (+folded BN) + tanh + linear + sigmoid heads
#               + mask/loss + "dec" recolor, one batch tile per grid step.
# ---------------------------------------------------------------------------
def _fused_kernel(x_ref, orig_ref, wbig_ref, cbias_ref, lbig_ref, lbias_ref,
                  heads_ref, col_ref, *, pixels):
    # x_ref    : [TB, 2*F]   flat features (cols [:F] = foreground, [F:] = background)
    # orig_ref : [TB, 3*P]   flattened original image (P = Ho*Wo)
    # wbig_ref : [2*F, 32]   block-diag folded conv(+BN) weights, both heads
    # cbias_ref: [1, 32]     folded conv(+BN) biases
    # lbig_ref : [32, 6]     block-diag linear weights (l1 | l2)
    # lbias_ref: [1, 6]      linear biases
    # heads_ref: [TB, 9]     packed (s | s_for | loss)
    # col_ref  : [TB, 3*P]   recolored image
    x = x_ref[...]

    # conv(+BN) for BOTH heads as one MXU matmul, then tanh, then both linears.
    h = jnp.tanh(jnp.dot(x, wbig_ref[...], preferred_element_type=jnp.float32)
                 + cbias_ref[...])                                      # [TB, 32]
    lin = (jnp.dot(h, lbig_ref[...], preferred_element_type=jnp.float32)
           + lbias_ref[...])                                            # [TB, 6]

    s = _sigmoid(lin[:, 0:3])                       # 'background'
    s_for = (_sigmoid(lin[:, 3:6]) + 0.125) * 0.8   # 'foreground'

    diff = jnp.abs(s - s_for)
    # torch: mask = 0 where diff > thresh else 1; loss = 1000 * (1/diff) * mask
    loss = jnp.where(diff > THRESH, 0.0, 1000.0 / diff)

    heads_ref[...] = jnp.concatenate([s, s_for, loss], axis=-1)         # [TB, 9]

    # --- "dec" recolor: zeros -> s[channel], then ones -> s_for[channel] ---
    # Per-channel static lane slices: 2 compares + 2 selects per pixel.
    orig = orig_ref[...]                                                # [TB, 3*P]
    parts = []
    for c in range(3):
        o_c = orig[:, c * pixels:(c + 1) * pixels]                      # [TB, P]
        col_c = jnp.where(o_c == 0.0, s[:, c:c + 1], o_c)
        # second pass runs on the updated values: matches torch in-place order
        col_c = jnp.where(col_c == 1.0, s_for[:, c:c + 1], col_c)
        parts.append(col_c)
    col_ref[...] = jnp.concatenate(parts, axis=-1)


# ---------------------------------------------------------------------------
# Wrapper helpers
# ---------------------------------------------------------------------------
def _conv_head_matrix(w, b, gamma, beta, mean, var, H, W):
    """3x3 conv (pad 1) + BatchNorm (eval) folded into a dense [C*H*W, H*W] matrix."""
    C = w.shape[1]
    eye = jnp.eye(C * H * W, dtype=jnp.float32).reshape(C * H * W, C, H, W)
    m = lax.conv_general_dilated(eye, w.astype(jnp.float32), (1, 1), ((1, 1), (1, 1)),
                                 dimension_numbers=("NCHW", "OIHW", "NCHW"),
                                 precision=lax.Precision.HIGHEST)
    m = m.reshape(C * H * W, H * W)                      # rows = flattened input idx
    a = gamma / jnp.sqrt(var + BN_EPS)                   # (1,) single out channel
    w_eff = (m * a).astype(jnp.float32)
    b_eff = (b * a + (beta - mean * a)).astype(jnp.float32)   # (1,)
    return w_eff, b_eff


def _grid_plan(B, cap=512, min_steps=4):
    """Pick (batch_tile, padded_B, num_blocks).

    * tile is a multiple of 8 (sublane aligned) unless the batch is tiny,
    * tile <= cap, so double-buffered blocks (~21 KB/row) stay well under
      v7x's 64 MiB VMEM while still being large enough for HBM roofline,
    * >= min_steps grid steps whenever the batch allows it, so the "parallel"
      batch axis can be sharded across v7x's two TensorCores,
    * B is padded up to a multiple of the tile (outputs sliced back), instead
      of falling back to a single oversized block."""
    if B <= 8:
        return B, B, 1
    tb = min(cap, max(8, B // min_steps))
    tb = max(8, (tb // 8) * 8)
    padded = ((B + tb - 1) // tb) * tb
    return tb, padded, padded // tb


def init_params(key):
    ks = jax.random.split(key, 6)
    p = {}
    p['conv1_w'] = 0.1 * jax.random.normal(ks[0], (1, 16, 3, 3), jnp.float32)
    p['conv1_b'] = jnp.array([0.02], jnp.float32)
    p['bn1_gamma'] = jnp.array([0.9], jnp.float32)
    p['bn1_beta'] = jnp.array([0.05], jnp.float32)
    p['bn1_mean'] = jnp.array([0.1], jnp.float32)
    p['bn1_var'] = jnp.array([1.2], jnp.float32)
    p['l1_w'] = 0.2 * jax.random.normal(ks[1], (3, BOTTLE), jnp.float32)   # torch [out,in]
    p['l1_b'] = 0.05 * jax.random.normal(ks[2], (3,), jnp.float32)
    p['conv2_w'] = 0.1 * jax.random.normal(ks[3], (1, 16, 3, 3), jnp.float32)
    p['conv2_b'] = jnp.array([-0.03], jnp.float32)
    p['bn2_gamma'] = jnp.array([1.1], jnp.float32)
    p['bn2_beta'] = jnp.array([-0.02], jnp.float32)
    p['bn2_mean'] = jnp.array([-0.05], jnp.float32)
    p['bn2_var'] = jnp.array([0.8], jnp.float32)
    p['l2_w'] = 0.2 * jax.random.normal(ks[4], (3, BOTTLE), jnp.float32)
    p['l2_b'] = 0.05 * jax.random.normal(ks[5], (3,), jnp.float32)
    return p


def decoder_bg_forward(params, x, orig):
    # TODO(synk): BatchNorm2d is reproduced in eval mode only (running stats
    # folded into the conv matrix); training-mode batch statistics are not
    # reproduced.
    B, C, H, W = x.shape
    assert H * W == BOTTLE, "spatial size must match bottle (= 16)"
    ll = C // 2
    F = ll * H * W       # 256
    two_f = 2 * F        # 512

    # --- fold conv + BN into dense per-head matrices, pack block-diagonally ---
    # x.reshape(B, 2F) keeps torch's channel order: cols [:F] = x1 (foreground,
    # conv2/l2 path), cols [F:] = x (background, conv1/l1 path).  The weight
    # blocks are placed to match, so no wrapper-side concatenation is needed.
    w1_eff, b1_eff = _conv_head_matrix(params['conv1_w'], params['conv1_b'],
                                       params['bn1_gamma'], params['bn1_beta'],
                                       params['bn1_mean'], params['bn1_var'], H, W)
    w2_eff, b2_eff = _conv_head_matrix(params['conv2_w'], params['conv2_b'],
                                       params['bn2_gamma'], params['bn2_beta'],
                                       params['bn2_mean'], params['bn2_var'], H, W)
    w_big = jnp.zeros((two_f, 2 * BOTTLE), jnp.float32)
    w_big = w_big.at[F:, :BOTTLE].set(w1_eff)      # background rows -> hidden 0:16
    w_big = w_big.at[:F, BOTTLE:].set(w2_eff)      # foreground rows -> hidden 16:32
    cbias = jnp.concatenate([jnp.broadcast_to(b1_eff, (BOTTLE,)),
                             jnp.broadcast_to(b2_eff, (BOTTLE,))]).reshape(1, 2 * BOTTLE)

    l_big = jnp.zeros((2 * BOTTLE, 6), jnp.float32)
    l_big = l_big.at[:BOTTLE, 0:3].set(params['l1_w'].T)
    l_big = l_big.at[BOTTLE:, 3:6].set(params['l2_w'].T)
    lbias = jnp.concatenate([params['l1_b'], params['l2_b']]).reshape(1, 6)

    # lane-dense flattened inputs (free reshapes, no extra HBM pass)
    x_flat = x.reshape(B, two_f).astype(jnp.float32)                    # [B, 512]
    Ho, Wo = orig.shape[2], orig.shape[3]
    P = Ho * Wo
    orig2 = orig.reshape(B, 3 * P).astype(jnp.float32)                  # [B, 3*P]

    TB, padded_B, nb = _grid_plan(B)
    if padded_B != B:
        x_flat = jnp.pad(x_flat, ((0, padded_B - B), (0, 0)))
        orig2 = jnp.pad(orig2, ((0, padded_B - B), (0, 0)))

    # Explicit scoped-VMEM limit: > v5e/v6e defaults, < v7x's 64 MiB physical.
    block_bytes = 4 * TB * (two_f + 6 * P + 9)       # x + orig + col + heads / step
    vmem_limit = int(min(max(3 * block_bytes, 32 << 20), 48 << 20))

    # TODO(synk): torch mutates `orig` in place (dec aliases orig); here 'dec'
    # is returned as a fresh array (input_output_aliases intentionally skipped
    # so the caller's `orig` buffer stays valid).
    heads, col2 = pl.pallas_call(
        functools.partial(_fused_kernel, pixels=P),
        out_shape=(jax.ShapeDtypeStruct((padded_B, 9), jnp.float32),
                   jax.ShapeDtypeStruct((padded_B, 3 * P), jnp.float32)),
        grid=(nb,),
        in_specs=[
            pl.BlockSpec((TB, two_f), lambda i: (i, 0)),          # x_flat
            pl.BlockSpec((TB, 3 * P), lambda i: (i, 0)),          # orig
            pl.BlockSpec((two_f, 2 * BOTTLE), lambda i: (0, 0)),  # w_big
            pl.BlockSpec((1, 2 * BOTTLE), lambda i: (0, 0)),      # cbias
            pl.BlockSpec((2 * BOTTLE, 6), lambda i: (0, 0)),      # l_big
            pl.BlockSpec((1, 6), lambda i: (0, 0)),               # lbias
        ],
        out_specs=(
            pl.BlockSpec((TB, 9), lambda i: (i, 0)),
            pl.BlockSpec((TB, 3 * P), lambda i: (i, 0)),
        ),
        compiler_params=pltpu.CompilerParams(
            dimension_semantics=("parallel",),
            vmem_limit_bytes=vmem_limit),
    )(x_flat, orig2, w_big, cbias, l_big, lbias)

    if padded_B != B:
        heads = heads[:B]
        col2 = col2[:B]

    s = heads[:, 0:3]
    s_for = heads[:, 3:6]
    loss = heads[:, 6:9]
    col = col2.reshape(B, 3, Ho, Wo)
    return {'background': s, 'foreground': s_for, 'loss': loss, 'dec': col}


# ---------------------------------------------------------------------------
# Pure-JAX reference (mirrors the torch forward) for a correctness check.
# ---------------------------------------------------------------------------
def reference_forward(params, x, orig):
    B = x.shape[0]
    ll = x.shape[1] // 2
    x_fg = x[:, :ll]
    x_bg = x[:, ll:]

    def conv_bn_tanh(inp, w, b, gamma, beta, mean, var):
        out = lax.conv_general_dilated(inp, w, (1, 1), ((1, 1), (1, 1)),
                                       dimension_numbers=("NCHW", "OIHW", "NCHW"),
                                       precision=lax.Precision.HIGHEST)
        out = out + b[None, :, None, None]
        out = (out - mean[None, :, None, None]) / jnp.sqrt(var[None, :, None, None] + BN_EPS)
        out = out * gamma[None, :, None, None] + beta[None, :, None, None]
        return jnp.tanh(out)

    h1 = conv_bn_tanh(x_bg, params['conv1_w'], params['conv1_b'], params['bn1_gamma'],
                      params['bn1_beta'], params['bn1_mean'], params['bn1_var']).reshape(B, -1)
    s = jax.nn.sigmoid(h1 @ params['l1_w'].T + params['l1_b'])
    h2 = conv_bn_tanh(x_fg, params['conv2_w'], params['conv2_b'], params['bn2_gamma'],
                      params['bn2_beta'], params['bn2_mean'], params['bn2_var']).reshape(B, -1)
    s_for = (jax.nn.sigmoid(h2 @ params['l2_w'].T + params['l2_b']) + 0.125) * 0.8
    diff = jnp.abs(s - s_for)
    mask = jnp.where(diff > THRESH, 0.0, 1.0)
    loss = 1000.0 * (1.0 / diff) * mask
    col = orig
    col = jnp.where(col == 0.0, s[:, :, None, None], col)
    col = jnp.where(col == 1.0, s_for[:, :, None, None], col)
    return s, s_for, loss, col


if __name__ == "__main__":
    key = jax.random.PRNGKey(0)
    k_params, k_x, k_orig = jax.random.split(key, 3)
    params = init_params(k_params)

    B, H, W = 2, 4, 4                       # H*W must equal bottle (= 16)
    x = jax.random.normal(k_x, (B, 32, H, W), jnp.float32)

    Ho, Wo = 8, 8
    u = jax.random.uniform(k_orig, (B, 3, Ho, Wo), jnp.float32)
    orig = jnp.where(u < 0.3, 0.0, jnp.where(u > 0.7, 1.0, u))  # exact 0/1 pixels

    out = decoder_bg_forward(params, x, orig)
    jax.block_until_ready(out)

    s_r, sf_r, loss_r, col_r = reference_forward(params, x, orig)
    assert bool(jnp.allclose(out['background'], s_r, rtol=2e-3, atol=2e-3))
    assert bool(jnp.allclose(out['foreground'], sf_r, rtol=2e-3, atol=2e-3))
    assert bool(jnp.allclose(out['loss'], loss_r, rtol=1e-2, atol=1e-2))
    assert bool(jnp.allclose(out['dec'], col_r, rtol=2e-3, atol=2e-3))

    print("KERNEL_OK")
</pallas_src>

<mosaic_0001>
module attributes {stable_mosaic.version = 11 : i64} {
  func.func @_fused_kernel(%arg0: i32, %arg1: memref<2x512xf32, #tpu.memory_space<vmem>>, %arg2: memref<2x192xf32, #tpu.memory_space<vmem>>, %arg3: memref<512x32xf32, #tpu.memory_space<vmem>>, %arg4: memref<1x32xf32, #tpu.memory_space<vmem>>, %arg5: memref<32x6xf32, #tpu.memory_space<vmem>>, %arg6: memref<1x6xf32, #tpu.memory_space<vmem>>, %arg7: memref<2x9xf32, #tpu.memory_space<vmem>>, %arg8: memref<2x192xf32, #tpu.memory_space<vmem>>) attributes {dimension_semantics = [#tpu.dimension_semantics<parallel>], iteration_bounds = array<i64: 1>, scalar_prefetch = 0 : i64, scratch_operands = 0 : i64, tpu.core_type = #tpu.core_type<tc>, window_params = [{transform_indices = @transform_0, window_bounds = array<i64: 2, 512>}, {transform_indices = @transform_1, window_bounds = array<i64: 2, 192>}, {pipeline_mode = #tpu.pipeline_mode<synchronous>, transform_indices = @transform_2, window_bounds = array<i64: 512, 32>}, {pipeline_mode = #tpu.pipeline_mode<synchronous>, transform_indices = @transform_3, window_bounds = array<i64: 1, 32>}, {pipeline_mode = #tpu.pipeline_mode<synchronous>, transform_indices = @transform_4, window_bounds = array<i64: 32, 6>}, {pipeline_mode = #tpu.pipeline_mode<synchronous>, transform_indices = @transform_5, window_bounds = array<i64: 1, 6>}, {transform_indices = @transform_6, window_bounds = array<i64: 2, 9>}, {transform_indices = @transform_7, window_bounds = array<i64: 2, 192>}]} {
    %c0 = arith.constant 0 : index
    %c0_0 = arith.constant 0 : index
    %0 = vector.load %arg1[%c0, %c0_0] : memref<2x512xf32, #tpu.memory_space<vmem>>, vector<2x512xf32>
    %c0_1 = arith.constant 0 : index
    %c0_2 = arith.constant 0 : index
    %1 = vector.load %arg3[%c0_1, %c0_2] : memref<512x32xf32, #tpu.memory_space<vmem>>, vector<512x32xf32>
    %cst = arith.constant dense<0.000000e+00> : vector<2x32xf32>
    %2 = tpu.matmul %0, %1, %cst {dimension_numbers = #tpu.dot_dimension_numbers<[1], [0], [0], [1], [0, 0, 1, 1], [], []>} : vector<2x512xf32>, vector<512x32xf32>, vector<2x32xf32> -> vector<2x32xf32>
    %c0_3 = arith.constant 0 : index
    %c0_4 = arith.constant 0 : index
    %3 = vector.load %arg4[%c0_3, %c0_4] : memref<1x32xf32, #tpu.memory_space<vmem>>, vector<1x32xf32>
    %4 = vector.broadcast %3 : vector<1x32xf32> to vector<2x32xf32>
    %5 = arith.addf %2, %4 : vector<2x32xf32>
    %6 = math.tanh %5 : vector<2x32xf32>
    %c0_5 = arith.constant 0 : index
    %c0_6 = arith.constant 0 : index
    %7 = vector.load %arg5[%c0_5, %c0_6] : memref<32x6xf32, #tpu.memory_space<vmem>>, vector<32x6xf32>
    %cst_7 = arith.constant dense<0.000000e+00> : vector<2x6xf32>
    %8 = tpu.matmul %6, %7, %cst_7 {dimension_numbers = #tpu.dot_dimension_numbers<[1], [0], [0], [1], [0, 0, 1, 1], [], []>} : vector<2x32xf32>, vector<32x6xf32>, vector<2x6xf32> -> vector<2x6xf32>
    %c0_8 = arith.constant 0 : index
    %c0_9 = arith.constant 0 : index
    %9 = vector.load %arg6[%c0_8, %c0_9] : memref<1x6xf32, #tpu.memory_space<vmem>>, vector<1x6xf32>
    %10 = vector.broadcast %9 : vector<1x6xf32> to vector<2x6xf32>
    %11 = arith.addf %8, %10 : vector<2x6xf32>
    %12 = vector.extract_strided_slice %11 {offsets = [0, 0], sizes = [2, 3], strides = [1, 1]} : vector<2x6xf32> to vector<2x3xf32>
    %cst_10 = arith.constant 0.000000e+00 : f32
    %13 = vector.broadcast %cst_10 : f32 to vector<2x3xf32>
    %14 = arith.subf %13, %12 : vector<2x3xf32>
    %15 = math.exp %14 : vector<2x3xf32>
    %cst_11 = arith.constant 1.000000e+00 : f32
    %16 = vector.broadcast %cst_11 : f32 to vector<2x3xf32>
    %17 = arith.addf %16, %15 : vector<2x3xf32>
    %18 = tpu.reciprocal %17 : vector<2x3xf32> -> vector<2x3xf32>
    %19 = vector.extract_strided_slice %11 {offsets = [0, 3], sizes = [2, 3], strides = [1, 1]} : vector<2x6xf32> to vector<2x3xf32>
    %cst_12 = arith.constant 0.000000e+00 : f32
    %20 = vector.broadcast %cst_12 : f32 to vector<2x3xf32>
    %21 = arith.subf %20, %19 : vector<2x3xf32>
    %22 = math.exp %21 : vector<2x3xf32>
    %cst_13 = arith.constant 1.000000e+00 : f32
    %23 = vector.broadcast %cst_13 : f32 to vector<2x3xf32>
    %24 = arith.addf %23, %22 : vector<2x3xf32>
    %25 = tpu.reciprocal %24 : vector<2x3xf32> -> vector<2x3xf32>
    %cst_14 = arith.constant 1.250000e-01 : f32
    %26 = vector.broadcast %cst_14 : f32 to vector<2x3xf32>
    %27 = arith.addf %25, %26 : vector<2x3xf32>
    %cst_15 = arith.constant 8.000000e-01 : f32
    %28 = vector.broadcast %cst_15 : f32 to vector<2x3xf32>
    %29 = arith.mulf %27, %28 : vector<2x3xf32>
    %30 = arith.subf %18, %29 : vector<2x3xf32>
    %31 = math.absf %30 : vector<2x3xf32>
    %cst_16 = arith.constant 9.99999974E-6 : f32
    %32 = vector.broadcast %cst_16 : f32 to vector<2x3xf32>
    %33 = arith.cmpf ogt, %31, %32 : vector<2x3xf32>
    %cst_17 = arith.constant 1.000000e+03 : f32
    %34 = vector.broadcast %cst_17 : f32 to vector<2x3xf32>
    %35 = arith.divf %34, %31 : vector<2x3xf32>
    %cst_18 = arith.constant 0.000000e+00 : f32
    %36 = vector.broadcast %cst_18 : f32 to vector<2x3xf32>
    %37 = arith.select %33, %36, %35 : vector<2x3xi1>, vector<2x3xf32>
    %38 = tpu.concatenate %18, %29, %37 in 1 : vector<2x3xf32>, vector<2x3xf32>, vector<2x3xf32> -> vector<2x9xf32>
    %c0_19 = arith.constant 0 : index
    %c0_20 = arith.constant 0 : index
    %39 = vector.load %arg7[%c0_19, %c0_20] : memref<2x9xf32, #tpu.memory_space<vmem>>, vector<2x9xf32>
    tpu.vector_store %arg7[%c0_19, %c0_20], %38 {strides = array<i32>} : memref<2x9xf32, #tpu.memory_space<vmem>>, vector<2x9xf32>,
    %c0_21 = arith.constant 0 : index
    %c0_22 = arith.constant 0 : index
    %40 = vector.load %arg2[%c0_21, %c0_22] : memref<2x192xf32, #tpu.memory_space<vmem>>, vector<2x192xf32>
    %41 = vector.extract_strided_slice %40 {offsets = [0, 0], sizes = [2, 64], strides = [1, 1]} : vector<2x192xf32> to vector<2x64xf32>
    %cst_23 = arith.constant 0.000000e+00 : f32
    %42 = vector.broadcast %cst_23 : f32 to vector<2x64xf32>
    %43 = arith.cmpf oeq, %41, %42 : vector<2x64xf32>
    %44 = vector.extract_strided_slice %18 {offsets = [0, 0], sizes = [2, 1], strides = [1, 1]} : vector<2x3xf32> to vector<2x1xf32>
    %45 = vector.shape_cast %44 : vector<2x1xf32> to vector<2x1xf32>
    %46 = vector.broadcast %45 : vector<2x1xf32> to vector<2x64xf32>
    %47 = arith.select %43, %46, %41 : vector<2x64xi1>, vector<2x64xf32>
    %cst_24 = arith.constant 1.000000e+00 : f32
    %48 = vector.broadcast %cst_24 : f32 to vector<2x64xf32>
    %49 = arith.cmpf oeq, %47, %48 : vector<2x64xf32>
    %50 = vector.extract_strided_slice %29 {offsets = [0, 0], sizes = [2, 1], strides = [1, 1]} : vector<2x3xf32> to vector<2x1xf32>
    %51 = vector.shape_cast %50 : vector<2x1xf32> to vector<2x1xf32>
    %52 = vector.broadcast %51 : vector<2x1xf32> to vector<2x64xf32>
    %53 = arith.select %49, %52, %47 : vector<2x64xi1>, vector<2x64xf32>
    %54 = vector.extract_strided_slice %40 {offsets = [0, 64], sizes = [2, 64], strides = [1, 1]} : vector<2x192xf32> to vector<2x64xf32>
    %cst_25 = arith.constant 0.000000e+00 : f32
    %55 = vector.broadcast %cst_25 : f32 to vector<2x64xf32>
    %56 = arith.cmpf oeq, %54, %55 : vector<2x64xf32>
    %57 = vector.extract_strided_slice %18 {offsets = [0, 1], sizes = [2, 1], strides = [1, 1]} : vector<2x3xf32> to vector<2x1xf32>
    %58 = vector.shape_cast %57 : vector<2x1xf32> to vector<2x1xf32>
    %59 = vector.broadcast %58 : vector<2x1xf32> to vector<2x64xf32>
    %60 = arith.select %56, %59, %54 : vector<2x64xi1>, vector<2x64xf32>
    %cst_26 = arith.constant 1.000000e+00 : f32
    %61 = vector.broadcast %cst_26 : f32 to vector<2x64xf32>
    %62 = arith.cmpf oeq, %60, %61 : vector<2x64xf32>
    %63 = vector.extract_strided_slice %29 {offsets = [0, 1], sizes = [2, 1], strides = [1, 1]} : vector<2x3xf32> to vector<2x1xf32>
    %64 = vector.shape_cast %63 : vector<2x1xf32> to vector<2x1xf32>
    %65 = vector.broadcast %64 : vector<2x1xf32> to vector<2x64xf32>
    %66 = arith.select %62, %65, %60 : vector<2x64xi1>, vector<2x64xf32>
    %67 = vector.extract_strided_slice %40 {offsets = [0, 128], sizes = [2, 64], strides = [1, 1]} : vector<2x192xf32> to vector<2x64xf32>
    %cst_27 = arith.constant 0.000000e+00 : f32
    %68 = vector.broadcast %cst_27 : f32 to vector<2x64xf32>
    %69 = arith.cmpf oeq, %67, %68 : vector<2x64xf32>
    %70 = vector.extract_strided_slice %18 {offsets = [0, 2], sizes = [2, 1], strides = [1, 1]} : vector<2x3xf32> to vector<2x1xf32>
    %71 = vector.shape_cast %70 : vector<2x1xf32> to vector<2x1xf32>
    %72 = vector.broadcast %71 : vector<2x1xf32> to vector<2x64xf32>
    %73 = arith.select %69, %72, %67 : vector<2x64xi1>, vector<2x64xf32>
    %cst_28 = arith.constant 1.000000e+00 : f32
    %74 = vector.broadcast %cst_28 : f32 to vector<2x64xf32>
    %75 = arith.cmpf oeq, %73, %74 : vector<2x64xf32>
    %76 = vector.extract_strided_slice %29 {offsets = [0, 2], sizes = [2, 1], strides = [1, 1]} : vector<2x3xf32> to vector<2x1xf32>
    %77 = vector.shape_cast %76 : vector<2x1xf32> to vector<2x1xf32>
    %78 = vector.broadcast %77 : vector<2x1xf32> to vector<2x64xf32>
    %79 = arith.select %75, %78, %73 : vector<2x64xi1>, vector<2x64xf32>
    %80 = tpu.concatenate %53, %66, %79 in 1 : vector<2x64xf32>, vector<2x64xf32>, vector<2x64xf32> -> vector<2x192xf32>
    %c0_29 = arith.constant 0 : index
    %c0_30 = arith.constant 0 : index
    %81 = vector.load %arg8[%c0_29, %c0_30] : memref<2x192xf32, #tpu.memory_space<vmem>>, vector<2x192xf32>
    tpu.vector_store %arg8[%c0_29, %c0_30], %80 {strides = array<i32>} : memref<2x192xf32, #tpu.memory_space<vmem>>, vector<2x192xf32>,
    return
  }
  func.func @transform_0(%arg0: i32) -> (i32, i32) {
    %c0_i32 = arith.constant 0 : i32
    %c0_i32_0 = arith.constant 0 : i32
    return %arg0, %c0_i32 : i32, i32
  }
  func.func @transform_1(%arg0: i32) -> (i32, i32) {
    %c0_i32 = arith.constant 0 : i32
    %c0_i32_0 = arith.constant 0 : i32
    return %arg0, %c0_i32 : i32, i32
  }
  func.func @transform_2(%arg0: i32) -> (i32, i32) {
    %c0_i32 = arith.constant 0 : i32
    %c0_i32_0 = arith.constant 0 : i32
    %c0_i32_1 = arith.constant 0 : i32
    return %c0_i32, %c0_i32_0 : i32, i32
  }
  func.func @transform_3(%arg0: i32) -> (i32, i32) {
    %c0_i32 = arith.constant 0 : i32
    %c0_i32_0 = arith.constant 0 : i32
    %c0_i32_1 = arith.constant 0 : i32
    return %c0_i32, %c0_i32_0 : i32, i32
  }
  func.func @transform_4(%arg0: i32) -> (i32, i32) {
    %c0_i32 = arith.constant 0 : i32
    %c0_i32_0 = arith.constant 0 : i32
    %c0_i32_1 = arith.constant 0 : i32
    return %c0_i32, %c0_i32_0 : i32, i32
  }
  func.func @transform_5(%arg0: i32) -> (i32, i32) {
    %c0_i32 = arith.constant 0 : i32
    %c0_i32_0 = arith.constant 0 : i32
    %c0_i32_1 = arith.constant 0 : i32
    return %c0_i32, %c0_i32_0 : i32, i32
  }
  func.func @transform_6(%arg0: i32) -> (i32, i32) {
    %c0_i32 = arith.constant 0 : i32
    %c0_i32_0 = arith.constant 0 : i32
    return %arg0, %c0_i32 : i32, i32
  }
  func.func @transform_7(%arg0: i32) -> (i32, i32) {
    %c0_i32 = arith.constant 0 : i32
    %c0_i32_0 = arith.constant 0 : i32
    return %arg0, %c0_i32 : i32, i32
  }
}

</mosaic_0001>

<bundles_post_ra>
// kernel: tpu_custom_call.1
= control target key start
LH: loop header
LB: loop body
LE: loop exit
PB: predicated region body
PF: predicated region fallthrough
CT: control target
= control target key end

     0   :  { %13 = vsyncpa [#allocation3], 0  ;;  %v696_v47 = vmov 1983009808   ;;  %v104_v49 = vlaneseq  ;;  %s1010_s0 = inlined_call_operand.vmem [shape: f32[2,512], index: 0, kind: input, shape index: {}]   ;;  %s1011_s1 = inlined_call_operand.vmem [shape: f32[2,192], index: 1, kind: input, shape index: {}]   ;;  %s1012_s2 = inlined_call_operand.vmem [shape: f32[512,32], index: 2, kind: input, shape index: {}]   ;;  %s1013_s3 = inlined_call_operand.vmem [shape: f32[1,32], index: 3, kind: input, shape index: {}]   ;;  %s1014_s4 = inlined_call_operand.vmem [shape: f32[32,6], index: 4, kind: input, shape index: {}]   ;;  %s1015_s5 = inlined_call_operand.vmem [shape: f32[1,6], index: 5, kind: input, shape index: {}]   ;;  %s1016_s6 = inlined_call_operand.hbm [shape: f32[2,9], index: 6, kind: output, shape index: {0}]   ;;  %s1017_s7 = inlined_call_operand.hbm [shape: f32[2,192], index: 7, kind: output, shape index: {1}]  }
   0x1   :  { %v44_v0 = vld [vmem:[%s1012_s2 + $0x80] sm:$0xff]  ;;  %v45_v1 = vld [vmem:[%s1012_s2 + $0x88] sm:$0xff]  ;;  %v46_v11 = vld [vmem:[%s1012_s2 + $0x90] sm:$0xff]  ;;  %v102_v48 = vunpack.c.l.s4 %v696_v47 }
   0x2   :  { %v28_v2 = vld [vmem:[%s1012_s2] sm:$0xff]  ;;  %v548_v3 = vpack.c.bf16 %v45_v1, %v44_v0  ;;  %v29_v4 = vld [vmem:[%s1012_s2 + $0x8] sm:$0xff]  ;;  %v47_v13 = vld [vmem:[%s1012_s2 + $0x98] sm:$0xff]  ;;  %v105_v0 = vshrl.u32 %v104_v49, 7 }
   0x3   :  { %v76_v5 = vld [vmem:[%s1012_s2 + $0x180] sm:$0xff]  ;;  %v77_v6 = vld [vmem:[%s1012_s2 + $0x188] sm:$0xff]  ;;  %v550_v7 = vpack.c.bf16 %v29_v4, %v28_v2  ;;  %v30_v14 = vld [vmem:[%s1012_s2 + $0x10] sm:$0xff]  ;;  %v552_v16 = vpack.c.bf16 %v47_v13, %v46_v11  ;;  %v103_v63 = vunpack.c.0.s8 %v102_v48 }
   0x4   :  { %v580_v8 = vpack.c.bf16 %v77_v6, %v76_v5  ;;  %v60_v9 = vld [vmem:[%s1012_s2 + $0x100] sm:$0xff]  ;;  %v61_v10 = vld [vmem:[%s1012_s2 + $0x108] sm:$0xff]  ;;  %549 = vmatprep.subr.bf16.mxu0 %v548_v3  ;;  %v31_v15 = vld [vmem:[%s1012_s2 + $0x18] sm:$0xff] }
   0x5   :  { %v582_v12 = vpack.c.bf16 %v61_v10, %v60_v9  ;;  %551 = vmatpush3.bf16.msra.mxu0 %v550_v7  ;;  %v554_v17 = vpack.c.bf16 %v31_v15, %v30_v14  ;;  %v78_v18 = vld [vmem:[%s1012_s2 + $0x190] sm:$0xff]  ;;  %v79_v19 = vld [vmem:[%s1012_s2 + $0x198] sm:$0xff]  ;;  %v48_v23 = vld [vmem:[%s1012_s2 + $0xa0] sm:$0xff]  ;;  %v900_v13 = vsub.s32 %v103_v63, %v105_v0 }
   0x6   :  { %581 = vmatprep.subr.bf16.mxu1 %v580_v8  ;;  %v62_v20 = vld [vmem:[%s1012_s2 + $0x110] sm:$0xff]  ;;  %v584_v21 = vpack.c.bf16 %v79_v19, %v78_v18  ;;  %v63_v22 = vld [vmem:[%s1012_s2 + $0x118] sm:$0xff]  ;;  %v49_v24 = vld [vmem:[%s1012_s2 + $0xa8] sm:$0xff]  ;;  %553 = vmatprep.subr.bf16.mxu0 %v552_v16 }
   0x7   :  { %583 = vmatpush3.bf16.msra.mxu1 %v582_v12  ;;  %v586_v25 = vpack.c.bf16 %v63_v22, %v62_v20  ;;  %v556_v26 = vpack.c.bf16 %v49_v24, %v48_v23  ;;  %v32_v27 = vld [vmem:[%s1012_s2 + $0x20] sm:$0xff]  ;;  %v33_v28 = vld [vmem:[%s1012_s2 + $0x28] sm:$0xff]  ;;  %v50_v35 = vld [vmem:[%s1012_s2 + $0xb0] sm:$0xff] }
   0x8   :  { %v80_v29 = vld [vmem:[%s1012_s2 + $0x1a0] sm:$0xff]  ;;  %585 = vmatprep.subr.bf16.mxu1 %v584_v21  ;;  %v81_v30 = vld [vmem:[%s1012_s2 + $0x1a8] sm:$0xff]  ;;  %v558_v33 = vpack.c.bf16 %v33_v28, %v32_v27  ;;  %v51_v36 = vld [vmem:[%s1012_s2 + $0xb8] sm:$0xff] }
   0x9   :  { %v64_v31 = vld [vmem:[%s1012_s2 + $0x120] sm:$0xff]  ;;  %v65_v32 = vld [vmem:[%s1012_s2 + $0x128] sm:$0xff]  ;;  %555 = vmatpush3.bf16.msra.mxu0 %v554_v17  ;;  %v588_v34 = vpack.c.bf16 %v81_v30, %v80_v29  ;;  %v34_v37 = vld [vmem:[%s1012_s2 + $0x30] sm:$0xff]  ;;  %v560_v39 = vpack.c.bf16 %v51_v36, %v50_v35 }
   0xa   :  { %557 = vmatprep.subr.bf16.mxu0 %v556_v26  ;;  %v590_v38 = vpack.c.bf16 %v65_v32, %v64_v31  ;;  %v35_v40 = vld [vmem:[%s1012_s2 + $0x38] sm:$0xff]  ;;  %v82_v41 = vld [vmem:[%s1012_s2 + $0x1b0] sm:$0xff]  ;;  %v52_v46 = vld [vmem:[%s1012_s2 + $0xc0] sm:$0xff] }
   0xb   :  { %587 = vmatpush3.bf16.msra.mxu1 %v586_v25  ;;  %v83_v42 = vld [vmem:[%s1012_s2 + $0x1b8] sm:$0xff]  ;;  %v66_v44 = vld [vmem:[%s1012_s2 + $0x130] sm:$0xff]  ;;  %v53_v50 = vld [vmem:[%s1012_s2 + $0xc8] sm:$0xff]  ;;  %v562_v51 = vpack.c.bf16 %v35_v40, %v34_v37 }
   0xc   :  { %589 = vmatprep.subr.bf16.mxu1 %v588_v34  ;;  %v592_v43 = vpack.c.bf16 %v83_v42, %v82_v41  ;;  %v67_v45 = vld [vmem:[%s1012_s2 + $0x138] sm:$0xff]  ;;  %v84_v52 = vld [vmem:[%s1012_s2 + $0x1c0] sm:$0xff]  ;;  %v85_v53 = vld [vmem:[%s1012_s2 + $0x1c8] sm:$0xff]  ;;  %v564_v55 = vpack.c.bf16 %v53_v50, %v52_v46 }
   0xd   :  { %559 = vmatpush3.bf16.msra.mxu0 %v558_v33  ;;  %v594_v54 = vpack.c.bf16 %v67_v45, %v66_v44  ;;  %v36_v56 = vld [vmem:[%s1012_s2 + $0x40] sm:$0xff]  ;;  %v37_v57 = vld [vmem:[%s1012_s2 + $0x48] sm:$0xff]  ;;  %v596_v59 = vpack.c.bf16 %v85_v53, %v84_v52  ;;  %v54_v61 = vld [vmem:[%s1012_s2 + $0xd0] sm:$0xff] }
   0xe   :  { %561 = vmatprep.subr.bf16.mxu0 %v560_v39  ;;  %v68_v58 = vld [vmem:[%s1012_s2 + $0x140] sm:$0xff]  ;;  %v69_v60 = vld [vmem:[%s1012_s2 + $0x148] sm:$0xff]  ;;  %v55_v62 = vld [vmem:[%s1012_s2 + $0xd8] sm:$0xff]  ;;  %v566_v3 = vpack.c.bf16 %v37_v57, %v36_v56 }
   0xf   :  { %591 = vmatpush3.bf16.msra.mxu1 %v590_v38  ;;  %v86_v1 = vld [vmem:[%s1012_s2 + $0x1d0] sm:$0xff]  ;;  %v87_v2 = vld [vmem:[%s1012_s2 + $0x1d8] sm:$0xff]  ;;  %v598_v4 = vpack.c.bf16 %v69_v60, %v68_v58  ;;  %v568_v5 = vpack.c.bf16 %v55_v62, %v54_v61  ;;  %v56_v11 = vld [vmem:[%s1012_s2 + $0xe0] sm:$0xff] }
  0x10   :  { %593 = vmatprep.subr.bf16.mxu1 %v592_v43  ;;  %v38_v6 = vld [vmem:[%s1012_s2 + $0x50] sm:$0xff]  ;;  %v39_v7 = vld [vmem:[%s1012_s2 + $0x58] sm:$0xff]  ;;  %v600_v9 = vpack.c.bf16 %v87_v2, %v86_v1  ;;  %v57_v12 = vld [vmem:[%s1012_s2 + $0xe8] sm:$0xff] }
  0x11   :  { %563 = vmatpush3.bf16.msra.mxu0 %v562_v51  ;;  %v70_v8 = vld [vmem:[%s1012_s2 + $0x150] sm:$0xff]  ;;  %v71_v10 = vld [vmem:[%s1012_s2 + $0x158] sm:$0xff]  ;;  %v88_v14 = vld [vmem:[%s1012_s2 + $0x1e0] sm:$0xff]  ;;  %v570_v16 = vpack.c.bf16 %v39_v7, %v38_v6  ;;  %v572_v20 = vpack.c.bf16 %v57_v12, %v56_v11 }
  0x12   :  { %565 = vmatprep.subr.bf16.mxu0 %v564_v55  ;;  %v89_v15 = vld [vmem:[%s1012_s2 + $0x1e8] sm:$0xff]  ;;  %v40_v17 = vld [vmem:[%s1012_s2 + $0x60] sm:$0xff]  ;;  %v602_v19 = vpack.c.bf16 %v71_v10, %v70_v8 }
  0x13   :  { %595 = vmatpush3.bf16.msra.mxu1 %v594_v54  ;;  %v41_v18 = vld [vmem:[%s1012_s2 + $0x68] sm:$0xff]  ;;  %v72_v21 = vld [vmem:[%s1012_s2 + $0x160] sm:$0xff] }
  0x14   :  { %597 = vmatprep.subr.bf16.mxu1 %v596_v59  ;;  %v27_v22 = vld [vmem:[%s1010_s0] sm:$0xff] }
  0x15   :  { %567 = vmatpush3.bf16.msra.mxu0 %v566_v3 }
  0x16   :  { %569 = vmatprep.subr.bf16.mxu0 %v568_v5 }
  0x17   :  { %599 = vmatpush3.bf16.msra.mxu1 %v598_v4 }
  0x18   :  { %14 = vsyncpa [#allocation5], 0  ;;  %601 = vmatprep.subr.bf16.mxu1 %v600_v9  ;;  %v604_v23 = vpack.c.bf16 %v89_v15, %v88_v14  ;;  %v73_v24 = vld [vmem:[%s1012_s2 + $0x168] sm:$0xff]  ;;  %v58_v25 = vld [vmem:[%s1012_s2 + $0xf0] sm:$0xff]  ;;  %v107_v27 = vrot.slane %v27_v22, %v900_v13  ;;  %v100_v28 = vcombine.high %v27_v22, %v27_v22  ;;  %v574_v31 = vpack.c.bf16 %v41_v18, %v40_v17  ;;  %s707_s26 = smov 6  }
  0x19   :  { %v59_v26 = vld [vmem:[%s1012_s2 + $0xf8] sm:$0xff]  ;;  %v90_v29 = vld [vmem:[%s1012_s2 + $0x1f0] sm:$0xff]  ;;  %571 = vmatpush3.bf16.msra.mxu0 %v570_v16  ;;  %v606_v34 = vpack.c.bf16 %v73_v24, %v72_v21  ;;  %v262_v44 = vld [vmem:[%s1014_s4] sm:$0xff]  ;;  %v697_v47 = vmov 0.0|0.0   ;;  %vm698_vm0 = vmmov 0   ;;  %v699_v50 = vmov 0.0  }
  0x1a   :  { %v91_v30 = vld [vmem:[%s1012_s2 + $0x1f8] sm:$0xff]  ;;  %v115_v32 = vcombine.high %v107_v27, %v107_v27  ;;  %v114_v33 = vrot.slane %v100_v28, %v900_v13  ;;  %573 = vmatprep.subr.bf16.mxu0 %v572_v20  ;;  %v576_v35 = vpack.c.bf16 %v59_v26, %v58_v25  ;;  %v42_v36 = vld [vmem:[%s1012_s2 + $0x70] sm:$0xff]  ;;  %v263_v45 = vld [vmem:[%s1014_s4 + $0x8] sm:$0xff]  ;;  %vm273_vm1 = vcmask 261120  }
  0x1b   :  { %603 = vmatpush3.bf16.msra.mxu1 %v602_v19  ;;  %v43_v37 = vld [vmem:[%s1012_s2 + $0x78] sm:$0xff]  ;;  %v608_v38 = vpack.c.bf16 %v91_v30, %v90_v29  ;;  %v74_v39 = vld [vmem:[%s1012_s2 + $0x170] sm:$0xff]  ;;  %v613_v48 = vpack.c.bf16 %v263_v45, %v262_v44  ;;  %v459_v53 = vld [vmem:[%s1013_s3] ss:$0 sm:$0xff]  ;;  %v700_v62 = vmov 1   ;;  %v701_v63 = vmov 0  }
  0x1c   :  { %605 = vmatprep.subr.bf16.mxu1 %v604_v23  ;;  %v75_v40 = vld [vmem:[%s1012_s2 + $0x178] sm:$0xff]  ;;  %185 = vmatprep.mubr.f32.mxu0 %v115_v32  ;;  %v116_v41 = vcombine.high %v114_v33, %v114_v33  ;;  %v578_v42 = vpack.c.bf16 %v43_v37, %v42_v36  ;;  %v264_v46 = vld [vmem:[%s1014_s4 + $0x10] sm:$0xff]  ;;  %v460_v0 = vld [vmem:[%s1015_s5] ss:$0 sm:$0xff]  ;;  %v702_v11 = vmov 2   ;;  %s703_s3 = smov 125  }
  0x1d   :  { %575 = vmatpush3.bf16.msra.mxu0 %v574_v31  ;;  %v610_v43 = vpack.c.bf16 %v75_v40, %v74_v39  ;;  %v265_v49 = vld [vmem:[%s1014_s4 + $0x18] sm:$0xff]  ;;  %633 = vset.pattern.permute.xlu1 %v700_v62  ;;  %v704_v12 = vmov 3   ;;  %v705_v14 = vmov 4   ;;  %v706_v15 = vmov 5   ;;  %v374_v20 = vld [vmem:[%s1011_s1] sm:$0xf] }
  0x1e   :  { %255 = vmatprep.mubr.f32.mxu1 %v116_v41  ;;  %577 = vmatprep.subr.bf16.mxu0 %v576_v35  ;;  %v616_v51 = vpack.c.bf16 %v265_v49, %v264_v46  ;;  %v400_v21 = vrot.slane %v374_v20, 2  ;;  %vm375_vm2 = vcmp.eq.f32.partialorder %v374_v20, 0.0  ;;  %vm414_vm6 = vcmask 523264   ;;  %s708_s1 = smov [#allocation4]  }
  0x1f   :  { %607 = vmatpush3.bf16.msra.mxu1 %v606_v34  ;;  %632 = vset.pattern.permute.xlu0 %v701_v63  ;;  %vm427_vm9 = vcmask 1041408   ;;  %vm428_vm10 = vcmask 519170   ;;  %s447_s27 = sshll.u32 %s708_s1, 4  ;;  %s448_s27 = int_to_ptr.vmem [resolvable:$true] %s447_s27 }
  0x20   :  { %609 = vmatprep.subr.bf16.mxu1 %v608_v38  ;;  %vm402_vm4 = vcmp.eq.f32.partialorder %v400_v21, 0.0  ;;  %vm429_vm11 = vmor %vm428_vm10, %vm427_vm9  ;;  %s648_s0 = scalar_lea.vmem %s448_s27, 64  ;;  %p653_p1 = scmp.lt.s32.totalorder %s448_s27, %s448_s27 }
  0x21   :  { %579 = vmatpush3.bf16.msra.mxu0 %v578_v42  ;;  %p649_p0 = scmp.ne.s32.totalorder %s448_s27, %s648_s0  ;;  %p654_p2 = scmp.lt.s32.totalorder %s648_s0, %s648_s0 }
  0x22   :  { %612 = vmatprep.subr.bf16.mxu0 %v697_v47 }
  0x23   :  { %611 = vmatpush3.bf16.msra.mxu1 %v610_v43  ;;  %p655_p3 = por %p654_p2, %p653_p1 }
  0x24   :  { %186 = vmatmul.mubr.f32.vlgmr.msra.gmra.mrb[0].mxu0 %v107_v27 }
  0x25   :  { %545 = vmatprep.mubr.msk.f32.mxu0 %vm698_vm0, %v699_v50  ;;  %614 = vmatpush3.bf16.msra.mxu0 %v613_v48  ;;  %p656_p4 = pnand %p655_p3, %p649_p0 }
  0x26   :  { %256 = vmatmul.mubr.f32.vlgmr.msra.gmra.mrb[0].mxu1 %v114_v33  ;;  %615 = vmatprep.subr.bf16.mxu0 %v697_v47 }
  0x29   :  { %617 = vmatpush3.bf16.msra.mxu0 %v616_v51 }
  0xf7   :  { %v494_v52 = vpop.f32.mrb[0].mxu0 }
  0xf8   :  { %v495_v54 = vpop.f32.mrb[1].mxu0 }
  0xf9   :  { %v529_v55 = vpop.f32.mrb[0].mxu1  ;;  %v496_v56 = vadd.f32 %v495_v54, %v494_v52 }
  0xfa   :  { %v530_v57 = vpop.f32.mrb[1].mxu1 }
  0xfb   :  { %v531_v58 = vadd.f32 %v530_v57, %v529_v55  ;;  %v188_v59 = vadd.f32 %v496_v56, %v459_v53 }
  0xfd   :  { %v258_v60 = vadd.f32 %v531_v58, %v188_v59 }
  0xff   :  { %640 = vtanh.f32 %v258_v60 }
 0x109   :  { %v641_v61 = vpop.eup %640 }
 0x10a   :  { %546 = vmatmul.mubr.msk.f32.vlgmr.msra.gmra.mrb[2].mxu0 %vm273_vm1, %v641_v61 }
 0x1dd   :  { %v343_v1 = vpop.f32.mrb[2].mxu0 }
 0x1de   :  { %v344_v2 = vadd.f32 %v460_v0, %v343_v1  ;;  %v547_v3 = vpop.f32.mrb[3].mxu0 }
 0x1e0   :  { %v347_v4 = vsub.f32 0.0, %v344_v2 }
 0x1e2   :  { %v348_v5 = vmul.f32 1.442695, %v347_v4 }
 0x1e4   :  { %642 = vpow2.f32 %v348_v5 }
 0x1ee   :  { %v643_v6 = vpop.eup %642 }
 0x1ef   :  { %v350_v7 = vadd.f32 1.0, %v643_v6 }
 0x1f1   :  { %644 = vrcp.f32 %v350_v7 }
 0x1fb   :  { %v967_v8 = vpop.eup %644 }
 0x1fc   :  { %389 = vperm.xlu1 %633, %v967_v8   ;;  %v352_v9 = vadd.f32 0.125, %v967_v8 }
 0x1fe   :  { %v971_v10 = vmul.f32 0.8, %v352_v9 }
 0x200   :  { %634 = vset.pattern.permute.xlu1 %v702_v11  ;;  %355 = vrot.lane.b32.xlu0 %v971_v10, %s703_s3 }
 0x201   :  { %404 = vperm.xlu1 %634, %v967_v8  }
 0x204   :  { %378 = vperm.xlu0 %632, %v967_v8  }
 0x205   :  { %635 = vset.pattern.permute.xlu1 %v704_v12 }
 0x206   :  { %384 = vperm.xlu1 %635, %v971_v10  }
 0x208   :  { %636 = vset.pattern.permute.xlu0 %v705_v14 }
 0x209   :  { %395 = vperm.xlu0 %636, %v971_v10  }
 0x20a   :  { %637 = vset.pattern.permute.xlu1 %v706_v15 }
 0x20b   :  { %410 = vperm.xlu1 %637, %v971_v10  }
 0x20d   :  { %638 = vset.pattern.permute.xlu0 %v706_v15 }
 0x272   :  { %v356_v16 = vpop.permute.xlu0 %355 }
 0x273   :  { %v358_v17 = vsub.f32 %v967_v8, %v356_v16 }
 0x275   :  { %v359_v18 = vand.u32 2147483647, %v358_v17 }
 0x277   :  { %646 = vrcp.f32 %v359_v18  ;;  %vm360_vm3 = vcmp.gt.f32.partialorder %v359_v18, 1e-05 }
 0x27b   :  { %v390_v19 = vpop.permute.xlu1 %389 }
 0x27c   :  { %v392_v28 = vsel %vm375_vm2, %v390_v19, %v374_v20 }
 0x27d   :  { %vm393_vm7 = vcmp.eq.f32.partialorder %v392_v28, 1.0 }
 0x280   :  { %v405_v22 = vpop.permute.xlu1 %404 }
 0x281   :  { %v647_v23 = vpop.eup %646  ;;  %v407_v30 = vsel %vm402_vm4, %v405_v22, %v400_v21 }
 0x282   :  { %v362_v24 = vmul.f32 1000.0, %v647_v23  ;;  %vm408_vm8 = vcmp.eq.f32.partialorder %v407_v30, 1.0 }
 0x283   :  { %v379_v25 = vpop.permute.xlu0 %378 }
 0x284   :  { %v381_v26 = vsel %vm375_vm2, %v379_v25, %v374_v20  ;;  %v363_v27 = vsel %vm360_vm3, 0.0, %v362_v24 }
 0x285   :  { %v385_v29 = vpop.permute.xlu1 %384  ;;  %365 = vrot.lane.b32.xlu1 %v363_v27, %s707_s26  ;;  %vm382_vm5 = vcmp.eq.f32.partialorder %v381_v26, 1.0 }
 0x286   :  { %v387_v32 = vsel %vm382_vm5, %v385_v29, %v381_v26 }
 0x288   :  { %v396_v31 = vpop.permute.xlu0 %395 }
 0x289   :  { %v398_v33 = vsel %vm393_vm7, %v396_v31, %v392_v28 }
 0x28a   :  { %v411_v34 = vpop.permute.xlu1 %410  ;;  %v415_v35 = vsel %vm414_vm6, %v387_v32, %v398_v33 }
 0x28b   :  { %v413_v36 = vsel %vm408_vm8, %v411_v34, %v407_v30 }
 0x28c   :  { %v418_v37 = vcombine.low %v415_v35, %v413_v36 }
 0x28e   :  { %v425_v38 = vrot.slane %v418_v37, %v900_v13 }
 0x290   :  { %430 = vst.msk [vmem:[#allocation4] sm:$0xf] %vm429_vm11, %v425_v38 }
 0x291   :  { %659 = shalt.err (!%p656_p4)
}
 0x292   :  { %s660_s30 = scalar_lea.hbm %s1017_s7, 64 }
 0x293   :  { %p661_p5 = scmp.ne.s32.totalorder %s1017_s7, %s660_s30  ;;  %p664_p6 = scmp.lt.u32.totalorder %s660_s30, %s1017_s7 }
 0x295   :  { %p666_p7 = pnand %p664_p6, %p661_p5 }
 0x297   :  { %669 = shalt.err (!%p666_p7)
}
 0x298   :  { %450 = dma.vmem_to_hbm [thread:$0]  %s448_s27, 64, %s1017_s7, [#allocation5]   ;;  %vm368_vm12 = vcmask 23552   ;;  %vm370_vm13 = vcmask 48128   ;;  %vm372_vm14 = vcmask 66560  }
 0x299   :  { %s709_s14 = smov [#allocation2]   ;;  %v369_v39 = vsel %vm368_vm12, %v967_v8, %v971_v10 }
 0x29a   :  { %s437_s15 = sshll.u32 %s709_s14, 4  ;;  %s438_s15 = int_to_ptr.vmem [resolvable:$true] %s437_s15 }
 0x29b   :  { %s670_s16 = scalar_lea.vmem %s438_s15, 32  ;;  %p675_p9 = scmp.lt.s32.totalorder %s438_s15, %s438_s15 }
 0x29c   :  { %p671_p8 = scmp.ne.s32.totalorder %s438_s15, %s670_s16  ;;  %p676_p10 = scmp.lt.s32.totalorder %s670_s16, %s670_s16 }
 0x29e   :  { %p677_p11 = por %p676_p10, %p675_p9 }
 0x2a0   :  { %p678_p12 = pnand %p677_p11, %p671_p8 }
 0x2f7   :  { %v366_v13 = vpop.permute.xlu1 %365 }
 0x2f8   :  { %v371_v40 = vsel %vm370_vm13, %v369_v39, %v366_v13 }
 0x2f9   :  { %373 = vst.msk [vmem:[#allocation2] sm:$0x3] %vm372_vm14, %v371_v40 }
 0x2fa   :  { %681 = shalt.err (!%p678_p12)
}
 0x2fb   :  { %s682_s18 = scalar_lea.hbm %s1016_s6, 32 }
 0x2fc   :  { %p683_p13 = scmp.ne.s32.totalorder %s1016_s6, %s682_s18  ;;  %p686_p0 = scmp.lt.u32.totalorder %s682_s18, %s1016_s6 }
 0x2fe   :  { %p688_p1 = pnand %p686_p0, %p683_p13 }
 0x300   :  { %691 = shalt.err (!%p688_p1)
}
 0x301   :  { %440 = dma.vmem_to_hbm [thread:$0]  %s438_s15, 32, %s1016_s6, [#allocation3]  }
 0x302   :  { %692 = dma.done.wait [#allocation3], 32  }
 0x303   :  { %693 = vsyncadd [#allocation3], 4294967264 }
 0x304   :  { %694 = dma.done.wait [#allocation5], 64  }
 0x305   :  { %695 = vsyncadd [#allocation5], 4294967232 }
 0x306   :  { %457 = vsyncpa [#allocation3], 1 }
 0x307   :  { %458 = vsyncpa [#allocation5], 1 }

</bundles_post_ra>
